<compile_context>
chip_gen: v7x
topology: tpu7x:2x2x1
jax: 0.10.0
libtpu: 0.0.40
codegen_flags: <defaults>
</compile_context>

<pallas_src>
import jax
import jax.numpy as jnp
from jax.experimental import pallas as pl
from jax.experimental.pallas import tpu as pltpu


def _round_up(x, m):
    return (x + m - 1) // m * m


def ffn_kernel(x_ref, w1_ref, b1_ref, w2_ref, b2_ref, o_ref, acc_ref):
    # x_ref : (tm, D_pad) bf16     w1_ref: (D_pad, th) bf16   b1_ref: (1, th) f32
    # w2_ref: (th, D_pad) bf16     b2_ref: (1, D_pad)  f32
    # o_ref : (tm, D_pad) out dtype          acc_ref: (tm, D_pad) f32 scratch
    k = pl.program_id(1)

    @pl.when(k == 0)
    def _init():
        acc_ref[...] = jnp.zeros_like(acc_ref)

    # First matmul (bf16 in, f32 acc), bias + ReLU in f32.
    h = jnp.dot(x_ref[...], w1_ref[...], preferred_element_type=jnp.float32)
    h = jnp.maximum(h + b1_ref[...], 0.0)
    # Dropout (eval mode) == identity.  # TODO(synk): training-mode dropout.

    # Second matmul: accumulate the contribution of this hidden-dim slice.
    acc_ref[...] += jnp.dot(h.astype(w2_ref.dtype), w2_ref[...],
                            preferred_element_type=jnp.float32)

    @pl.when(k == pl.num_programs(1) - 1)
    def _finalize():
        o_ref[...] = (acc_ref[...] + b2_ref[...]).astype(o_ref.dtype)


def positionwise_ffn(x, w1, b1, w2, b2, *, tm=256, th=512):
    """x: [B, S, D].  w1: [D, H], b1: [H], w2: [H, D], b2: [D]."""
    B, S, D = x.shape
    H = w1.shape[1]
    M = B * S
    out_dtype = x.dtype

    # Lane-dense padding (multiples of 128 on lane dims, tm on the token dim).
    D_pad = _round_up(D, 128)
    th = min(th, _round_up(H, 128))
    assert th % 128 == 0
    H_pad = _round_up(H, th)
    M_pad = _round_up(M, tm)

    cdt = jnp.bfloat16  # MXU compute dtype (f32 accumulation inside the kernel)
    x2d = jnp.pad(x.reshape(M, D).astype(cdt),
                  ((0, M_pad - M), (0, D_pad - D)))
    w1p = jnp.pad(w1.astype(cdt), ((0, D_pad - D), (0, H_pad - H)))
    w2p = jnp.pad(w2.astype(cdt), ((0, H_pad - H), (0, D_pad - D)))
    b1p = jnp.pad(b1.astype(jnp.float32), (0, H_pad - H)).reshape(1, H_pad)
    b2p = jnp.pad(b2.astype(jnp.float32), (0, D_pad - D)).reshape(1, D_pad)

    grid = (M_pad // tm, H_pad // th)

    bytes_accessed = (x2d.size * x2d.dtype.itemsize
                      + w1p.size * w1p.dtype.itemsize
                      + w2p.size * w2p.dtype.itemsize
                      + b1p.size * b1p.dtype.itemsize
                      + b2p.size * b2p.dtype.itemsize
                      + M_pad * D_pad * jnp.dtype(out_dtype).itemsize)
    cost = pl.CostEstimate(flops=4 * M_pad * D_pad * H_pad,
                           transcendentals=0,
                           bytes_accessed=bytes_accessed)

    out2d = pl.pallas_call(
        ffn_kernel,
        out_shape=jax.ShapeDtypeStruct((M_pad, D_pad), out_dtype),
        grid_spec=pltpu.PrefetchScalarGridSpec(
            num_scalar_prefetch=0,
            grid=grid,
            in_specs=[
                pl.BlockSpec((tm, D_pad), lambda i, k: (i, 0)),   # x tile
                pl.BlockSpec((D_pad, th), lambda i, k: (0, k)),   # w1 column slab
                pl.BlockSpec((1, th),     lambda i, k: (0, k)),   # b1 slice
                pl.BlockSpec((th, D_pad), lambda i, k: (k, 0)),   # w2 row slab
                pl.BlockSpec((1, D_pad),  lambda i, k: (0, 0)),   # b2
            ],
            out_specs=pl.BlockSpec((tm, D_pad), lambda i, k: (i, 0)),
            scratch_shapes=[pltpu.VMEM((tm, D_pad), jnp.float32)],
        ),
        compiler_params=pltpu.CompilerParams(
            dimension_semantics=("parallel", "arbitrary"),
            vmem_limit_bytes=48 * 1024 * 1024,
        ),
        cost_estimate=cost,
    )(x2d, w1p, b1p, w2p, b2p)

    return out2d[:M, :D].reshape(B, S, D)


if __name__ == "__main__":
    # Small, lane-dense shapes consistent with the module's forward: [B, S, d_model]
    B, S, D, H = 2, 8, 128, 256

    key = jax.random.PRNGKey(0)
    kx, kw1, kb1, kw2, kb2 = jax.random.split(key, 5)

    x = jax.random.normal(kx, (B, S, D), dtype=jnp.float32)

    # Deterministic PyTorch-like Linear init: U(-1/sqrt(fan_in), 1/sqrt(fan_in))
    bound1 = 1.0 / (D ** 0.5)
    w1 = jax.random.uniform(kw1, (D, H), minval=-bound1, maxval=bound1, dtype=jnp.float32)
    b1 = jax.random.uniform(kb1, (H,), minval=-bound1, maxval=bound1, dtype=jnp.float32)
    bound2 = 1.0 / (H ** 0.5)
    w2 = jax.random.uniform(kw2, (H, D), minval=-bound2, maxval=bound2, dtype=jnp.float32)
    b2 = jax.random.uniform(kb2, (D,), minval=-bound2, maxval=bound2, dtype=jnp.float32)

    out = positionwise_ffn(x, w1, b1, w2, b2)
    out = jax.block_until_ready(out)

    # Pure-JAX f32 reference (eval-mode forward). Kernel uses bf16 MXU inputs
    # with f32 accumulation, so allow a small tolerance.
    ref = jnp.maximum(x @ w1 + b1, 0.0) @ w2 + b2
    assert out.shape == (B, S, D)
    assert jnp.allclose(out, ref, atol=2e-2, rtol=2e-2), "mismatch vs reference"

    print("KERNEL_OK")
</pallas_src>

<mosaic_0001>
module attributes {stable_mosaic.version = 11 : i64} {
  func.func @ffn_kernel(%arg0: i32, %arg1: i32, %arg2: memref<256x128xbf16, #tpu.memory_space<vmem>>, %arg3: memref<128x256xbf16, #tpu.memory_space<vmem>>, %arg4: memref<1x256xf32, #tpu.memory_space<vmem>>, %arg5: memref<256x128xbf16, #tpu.memory_space<vmem>>, %arg6: memref<1x128xf32, #tpu.memory_space<vmem>>, %arg7: memref<256x128xf32, #tpu.memory_space<vmem>>, %arg8: memref<256x128xf32, #tpu.memory_space<vmem>>) attributes {dimension_semantics = [#tpu.dimension_semantics<parallel>, #tpu.dimension_semantics<arbitrary>], iteration_bounds = array<i64: 1, 1>, scalar_prefetch = 0 : i64, scratch_operands = 1 : i64, tpu.core_type = #tpu.core_type<tc>, window_params = [{transform_indices = @transform_0, window_bounds = array<i64: 256, 128>}, {transform_indices = @transform_1, window_bounds = array<i64: 128, 256>}, {transform_indices = @transform_2, window_bounds = array<i64: 1, 256>}, {transform_indices = @transform_3, window_bounds = array<i64: 256, 128>}, {pipeline_mode = #tpu.pipeline_mode<synchronous>, transform_indices = @transform_4, window_bounds = array<i64: 1, 128>}, {transform_indices = @transform_5, window_bounds = array<i64: 256, 128>}]} {
    %c0_i32 = arith.constant 0 : i32
    %0 = arith.cmpi eq, %arg1, %c0_i32 : i32
    %1 = arith.extui %0 : i1 to i32
    %c0_i32_0 = arith.constant 0 : i32
    %2 = arith.cmpi ne, %1, %c0_i32_0 : i32
    scf.if %2 {
      %cst_16 = arith.constant 0.000000e+00 : f32
      %20 = vector.broadcast %cst_16 : f32 to vector<256x128xf32>
      %c0_17 = arith.constant 0 : index
      %c0_18 = arith.constant 0 : index
      %21 = vector.load %arg8[%c0_17, %c0_18] : memref<256x128xf32, #tpu.memory_space<vmem>>, vector<256x128xf32>
      tpu.vector_store %arg8[%c0_17, %c0_18], %20 {strides = array<i32>} : memref<256x128xf32, #tpu.memory_space<vmem>>, vector<256x128xf32>,
    } else {
    }
    %c0 = arith.constant 0 : index
    %c0_1 = arith.constant 0 : index
    %3 = vector.load %arg2[%c0, %c0_1] : memref<256x128xbf16, #tpu.memory_space<vmem>>, vector<256x128xbf16>
    %c0_2 = arith.constant 0 : index
    %c0_3 = arith.constant 0 : index
    %4 = vector.load %arg3[%c0_2, %c0_3] : memref<128x256xbf16, #tpu.memory_space<vmem>>, vector<128x256xbf16>
    %cst = arith.constant dense<0.000000e+00> : vector<256x256xf32>
    %5 = tpu.matmul %3, %4, %cst {dimension_numbers = #tpu.dot_dimension_numbers<[1], [0], [0], [1], [0, 0, 1, 1], [], []>} : vector<256x128xbf16>, vector<128x256xbf16>, vector<256x256xf32> -> vector<256x256xf32>
    %c0_4 = arith.constant 0 : index
    %c0_5 = arith.constant 0 : index
    %6 = vector.load %arg4[%c0_4, %c0_5] : memref<1x256xf32, #tpu.memory_space<vmem>>, vector<1x256xf32>
    %7 = vector.broadcast %6 : vector<1x256xf32> to vector<256x256xf32>
    %8 = arith.addf %5, %7 : vector<256x256xf32>
    %cst_6 = arith.constant 0.000000e+00 : f32
    %9 = vector.broadcast %cst_6 : f32 to vector<256x256xf32>
    %10 = arith.maximumf %8, %9 : vector<256x256xf32>
    %c0_7 = arith.constant 0 : index
    %c0_8 = arith.constant 0 : index
    %11 = vector.load %arg8[%c0_7, %c0_8] : memref<256x128xf32, #tpu.memory_space<vmem>>, vector<256x128xf32>
    %12 = arith.truncf %10 : vector<256x256xf32> to vector<256x256xbf16>
    %c0_9 = arith.constant 0 : index
    %c0_10 = arith.constant 0 : index
    %13 = vector.load %arg5[%c0_9, %c0_10] : memref<256x128xbf16, #tpu.memory_space<vmem>>, vector<256x128xbf16>
    %cst_11 = arith.constant dense<0.000000e+00> : vector<256x128xf32>
    %14 = tpu.matmul %12, %13, %cst_11 {dimension_numbers = #tpu.dot_dimension_numbers<[1], [0], [0], [1], [0, 0, 1, 1], [], []>} : vector<256x256xbf16>, vector<256x128xbf16>, vector<256x128xf32> -> vector<256x128xf32>
    %15 = arith.addf %11, %14 : vector<256x128xf32>
    %c0_12 = arith.constant 0 : index
    %c0_13 = arith.constant 0 : index
    %16 = vector.load %arg8[%c0_12, %c0_13] : memref<256x128xf32, #tpu.memory_space<vmem>>, vector<256x128xf32>
    tpu.vector_store %arg8[%c0_12, %c0_13], %15 {strides = array<i32>} : memref<256x128xf32, #tpu.memory_space<vmem>>, vector<256x128xf32>,
    %c0_i32_14 = arith.constant 0 : i32
    %17 = arith.cmpi eq, %arg1, %c0_i32_14 : i32
    %18 = arith.extui %17 : i1 to i32
    %c0_i32_15 = arith.constant 0 : i32
    %19 = arith.cmpi ne, %18, %c0_i32_15 : i32
    scf.if %19 {
      %c0_16 = arith.constant 0 : index
      %c0_17 = arith.constant 0 : index
      %20 = vector.load %arg8[%c0_16, %c0_17] : memref<256x128xf32, #tpu.memory_space<vmem>>, vector<256x128xf32>
      %c0_18 = arith.constant 0 : index
      %c0_19 = arith.constant 0 : index
      %21 = vector.load %arg6[%c0_18, %c0_19] : memref<1x128xf32, #tpu.memory_space<vmem>>, vector<1x128xf32>
      %22 = vector.broadcast %21 : vector<1x128xf32> to vector<256x128xf32>
      %23 = arith.addf %20, %22 : vector<256x128xf32>
      %c0_20 = arith.constant 0 : index
      %c0_21 = arith.constant 0 : index
      %24 = vector.load %arg7[%c0_20, %c0_21] : memref<256x128xf32, #tpu.memory_space<vmem>>, vector<256x128xf32>
      tpu.vector_store %arg7[%c0_20, %c0_21], %23 {strides = array<i32>} : memref<256x128xf32, #tpu.memory_space<vmem>>, vector<256x128xf32>,
    } else {
    }
    return
  }
  func.func @transform_0(%arg0: i32, %arg1: i32) -> (i32, i32) {
    %c0_i32 = arith.constant 0 : i32
    %c0_i32_0 = arith.constant 0 : i32
    return %arg0, %c0_i32 : i32, i32
  }
  func.func @transform_1(%arg0: i32, %arg1: i32) -> (i32, i32) {
    %c0_i32 = arith.constant 0 : i32
    %c0_i32_0 = arith.constant 0 : i32
    return %c0_i32, %arg1 : i32, i32
  }
  func.func @transform_2(%arg0: i32, %arg1: i32) -> (i32, i32) {
    %c0_i32 = arith.constant 0 : i32
    %c0_i32_0 = arith.constant 0 : i32
    return %c0_i32, %arg1 : i32, i32
  }
  func.func @transform_3(%arg0: i32, %arg1: i32) -> (i32, i32) {
    %c0_i32 = arith.constant 0 : i32
    %c0_i32_0 = arith.constant 0 : i32
    return %arg1, %c0_i32 : i32, i32
  }
  func.func @transform_4(%arg0: i32, %arg1: i32) -> (i32, i32) {
    %c0_i32 = arith.constant 0 : i32
    %c0_i32_0 = arith.constant 0 : i32
    %c0_i32_1 = arith.constant 0 : i32
    return %c0_i32, %c0_i32_0 : i32, i32
  }
  func.func @transform_5(%arg0: i32, %arg1: i32) -> (i32, i32) {
    %c0_i32 = arith.constant 0 : i32
    %c0_i32_0 = arith.constant 0 : i32
    return %arg0, %c0_i32 : i32, i32
  }
}

</mosaic_0001>

<bundles_post_ra>
// kernel: tpu_custom_call.1
= control target key start
LH: loop header
LB: loop body
LE: loop exit
PB: predicated region body
PF: predicated region fallthrough
CT: control target
= control target key end

     0   :  { %10 = vsyncpa [#allocation4], 0  ;;  %s1670_s0 = inlined_call_operand.hbm [shape: bf16[256,128], index: 0, kind: input, shape index: {}]   ;;  %s1671_s1 = inlined_call_operand.hbm [shape: bf16[128,256], index: 1, kind: input, shape index: {}]   ;;  %s1672_s2 = inlined_call_operand.vmem [shape: f32[1,256], index: 2, kind: input, shape index: {}]   ;;  %s1673_s3 = inlined_call_operand.hbm [shape: bf16[256,128], index: 3, kind: input, shape index: {}]   ;;  %s1674_s4 = inlined_call_operand.vmem [shape: f32[1,128], index: 4, kind: input, shape index: {}]   ;;  %s1675_s5 = inlined_call_operand.hbm [shape: f32[256,128], index: 5, kind: output, shape index: {}]  }
   0x1   :  { %11 = vsyncpa [#allocation7], 0 }
   0x2   :  { %12 = vsyncpa [#allocation5], 0  ;;  %s1453_s18 = smov [#allocation6]   ;;  %s1359_s22 = scalar_lea.hbm %s1671_s1, 2048 }
   0x3   :  { %s30_s19 = sshll.u32 %s1453_s18, 4  ;;  %p1360_p0 = scmp.ne.s32.totalorder %s1671_s1, %s1359_s22  ;;  %s31_s19 = int_to_ptr.vmem [resolvable:$true] %s30_s19 }
   0x4   :  { %p1363_p1 = scmp.lt.u32.totalorder %s1359_s22, %s1671_s1 }
   0x6   :  { %p1365_p2 = pnand %p1363_p1, %p1360_p0 }
   0x8   :  { %1368 = shalt.err (!%p1365_p2)
}
   0x9   :  { %s1369_s27 = scalar_lea.vmem %s31_s19, 2048  ;;  %p1374_p4 = scmp.lt.s32.totalorder %s31_s19, %s31_s19 }
   0xa   :  { %p1370_p3 = scmp.ne.s32.totalorder %s31_s19, %s1369_s27  ;;  %p1375_p5 = scmp.lt.s32.totalorder %s1369_s27, %s1369_s27 }
   0xc   :  { %p1376_p6 = por %p1375_p5, %p1374_p4 }
   0xe   :  { %p1377_p7 = pnand %p1376_p6, %p1370_p3 }
  0x10   :  { %1380 = shalt.err (!%p1377_p7)
}
  0x11   :  { %s1454_s28 = smov 128   ;;  %s1455_s29 = smov 8  }
  0x12   :  { %36 = dma.hbm_to_vmem [thread:$0]  %s1671_s1, 2048, %s31_s19, [#allocation7], %s1454_s28, %s1454_s28, %s1455_s29  }
  0x13   :  { %s1456_s7 = smov [#allocation3]   ;;  %s1381_s11 = scalar_lea.hbm %s1670_s0, 2048 }
  0x14   :  { %s18_s8 = sshll.u32 %s1456_s7, 4  ;;  %p1382_p8 = scmp.ne.s32.totalorder %s1670_s0, %s1381_s11  ;;  %s19_s8 = int_to_ptr.vmem [resolvable:$true] %s18_s8 }
  0x15   :  { %p1385_p9 = scmp.lt.u32.totalorder %s1381_s11, %s1670_s0 }
  0x17   :  { %p1387_p10 = pnand %p1385_p9, %p1382_p8 }
  0x19   :  { %1390 = shalt.err (!%p1387_p10)
}
  0x1a   :  { %s1391_s16 = scalar_lea.vmem %s19_s8, 2048  ;;  %p1396_p12 = scmp.lt.s32.totalorder %s19_s8, %s19_s8 }
  0x1b   :  { %p1392_p11 = scmp.ne.s32.totalorder %s19_s8, %s1391_s16  ;;  %p1397_p13 = scmp.lt.s32.totalorder %s1391_s16, %s1391_s16 }
  0x1d   :  { %p1398_p0 = por %p1397_p13, %p1396_p12 }
  0x1f   :  { %p1399_p1 = pnand %p1398_p0, %p1392_p11 }
  0x21   :  { %1402 = shalt.err (!%p1399_p1)
}
  0x22   :  { %s1457_s1 = smov 64   ;;  %s1458_s17 = smov 4  }
  0x23   :  { %24 = dma.hbm_to_vmem [thread:$0]  %s1670_s0, 2048, %s19_s8, [#allocation4], %s1457_s1, %s1457_s1, %s1458_s17  }
  0x24   :  { %s1459_s20 = smov [#allocation8]   ;;  %s1403_s24 = scalar_lea.hbm %s1673_s3, 2048 }
  0x25   :  { %s44_s21 = sshll.u32 %s1459_s20, 4  ;;  %p1404_p2 = scmp.ne.s32.totalorder %s1673_s3, %s1403_s24  ;;  %s45_s21 = int_to_ptr.vmem [resolvable:$true] %s44_s21 }
  0x26   :  { %p1407_p3 = scmp.lt.u32.totalorder %s1403_s24, %s1673_s3 }
  0x28   :  { %p1409_p4 = pnand %p1407_p3, %p1404_p2 }
  0x2a   :  { %1412 = shalt.err (!%p1409_p4)
}
  0x2b   :  { %s1413_s6 = scalar_lea.vmem %s45_s21, 2048  ;;  %p1418_p6 = scmp.lt.s32.totalorder %s45_s21, %s45_s21 }
  0x2c   :  { %p1414_p5 = scmp.ne.s32.totalorder %s45_s21, %s1413_s6  ;;  %p1419_p7 = scmp.lt.s32.totalorder %s1413_s6, %s1413_s6 }
  0x2e   :  { %p1420_p8 = por %p1419_p7, %p1418_p6 }
  0x30   :  { %p1421_p9 = pnand %p1420_p8, %p1414_p5 }
  0x32   :  { %1424 = shalt.err (!%p1421_p9)
}
  0x33   :  { %50 = dma.hbm_to_vmem [thread:$0]  %s1673_s3, 2048, %s45_s21, [#allocation7], %s1457_s1, %s1457_s1, %s1458_s17  }
  0x34   :  { %1447 = dma.done.wait [#allocation4], 2048  }
  0x35   :  { %1448 = vsyncadd [#allocation4], 4294965248 }
  0x36   :  { %1449 = dma.done.wait [#allocation7], 4096  }
  0x37   :  { %1450 = vsyncadd [#allocation7], 4294963200  ;;  %v1460_v0 = vmov 0   ;;  %v1303_v1 = vld [vmem:[#allocation6 + $0x4] ss:$8 sps:$4 sm:$0xff]   ;;  %v1347_v22 = vld [vmem:[#allocation8 + $0x50] sm:$0xff]   ;;  %v149_v49 = vlaneseq }
  0x38   :  { %367 = vmatprep.mubr.bf16.mxu0 %v1460_v0  ;;  %v1305_v2 = vld [vmem:[#allocation6] ss:$8 sps:$4 sm:$0xff]   ;;  %335 = vmatprep.subr.bf16.mxu0 %v1303_v1  ;;  %v1306_v3 = vld [vmem:[#allocation6 + $0x14] ss:$8 sps:$4 sm:$0xff]   ;;  %v1308_v4 = vld [vmem:[#allocation6 + $0x10] ss:$8 sps:$4 sm:$0xff]  }
  0x39   :  { %336 = vmatpush1.bf16.msra.mxu0 %v1305_v2  ;;  %v1309_v5 = vld [vmem:[#allocation6 + $0x24] ss:$8 sps:$4 sm:$0xff]   ;;  %v1311_v6 = vld [vmem:[#allocation6 + $0x20] ss:$8 sps:$4 sm:$0xff]   ;;  %v1312_v7 = vld [vmem:[#allocation6 + $0x34] ss:$8 sps:$4 sm:$0xff]  }
  0x3a   :  { %337 = vmatprep.subr.bf16.mxu0 %v1306_v3  ;;  %v1314_v8 = vld [vmem:[#allocation6 + $0x30] ss:$8 sps:$4 sm:$0xff]   ;;  %v1315_v9 = vld [vmem:[#allocation6 + $0x44] ss:$8 sps:$4 sm:$0xff]   ;;  %v1317_v10 = vld [vmem:[#allocation6 + $0x40] ss:$8 sps:$4 sm:$0xff]  }
  0x3b   :  { %v1318_v11 = vld [vmem:[#allocation6 + $0x54] ss:$8 sps:$4 sm:$0xff]   ;;  %v1320_v12 = vld [vmem:[#allocation6 + $0x50] ss:$8 sps:$4 sm:$0xff]   ;;  %v1321_v13 = vld [vmem:[#allocation6 + $0x64] ss:$8 sps:$4 sm:$0xff]  }
  0x3c   :  { %v1323_v14 = vld [vmem:[#allocation6 + $0x60] ss:$8 sps:$4 sm:$0xff]   ;;  %v1324_v15 = vld [vmem:[#allocation6 + $0x74] ss:$8 sps:$4 sm:$0xff]   ;;  %v1326_v16 = vld [vmem:[#allocation6 + $0x70] ss:$8 sps:$4 sm:$0xff]  }
  0x3d   :  { %338 = vmatpush1.bf16.msra.mxu0 %v1308_v4  ;;  %v1343_v17 = vld [vmem:[#allocation8 + $0x40] sm:$0xff]   ;;  %v1345_v20 = vld [vmem:[#allocation8 + $0x48] sm:$0xff]   ;;  %v1348_v23 = vld [vmem:[#allocation8 + $0x10] sm:$0xff]   ;;  %v150_v50 = vshrl.u32 %v149_v49, 7 }
  0x3e   :  { %339 = vmatprep.subr.bf16.mxu0 %v1309_v5  ;;  %v1327_v18 = vld [vmem:[#allocation3] sm:$0xff]   ;;  %1182 = vmatprep.subr.bf16.mxu1 %v1343_v17  ;;  %v1346_v21 = vld [vmem:[#allocation8 + $0x8] sm:$0xff]   ;;  %v1349_v24 = vld [vmem:[#allocation8 + $0x58] sm:$0xff]  }
  0x3f   :  { %v1344_v19 = vld [vmem:[#allocation8] sm:$0xff]   ;;  %v1328_v25 = vld [vmem:[#allocation3 + $0x8] sm:$0xff]   ;;  %v1350_v26 = vld [vmem:[#allocation8 + $0x18] sm:$0xff]   ;;  %v151_v51 = vsub.s32 0, %v150_v50  ;;  %v155_v53 = vsub.s32 1, %v150_v50 }
  0x40   :  { %1183 = vmatpush3.bf16.msra.mxu1 %v1344_v19  ;;  %v1351_v27 = vld [vmem:[#allocation8 + $0x60] sm:$0xff]   ;;  %v1353_v29 = vld [vmem:[#allocation8 + $0x68] sm:$0xff]   ;;  %v1329_v30 = vld [vmem:[#allocation3 + $0x10] sm:$0xff]  }
  0x41   :  { %340 = vmatpush1.bf16.msra.mxu0 %v1311_v6  ;;  %1184 = vmatprep.subr.bf16.mxu1 %v1345_v20  ;;  %v1352_v28 = vld [vmem:[#allocation8 + $0x20] sm:$0xff]   ;;  %v1330_v31 = vld [vmem:[#allocation3 + $0x18] sm:$0xff]   ;;  %v1332_v33 = vld [vmem:[#allocation3 + $0x28] sm:$0xff]  }
  0x42   :  { %341 = vmatprep.subr.bf16.mxu0 %v1312_v7  ;;  %v1331_v32 = vld [vmem:[#allocation3 + $0x20] sm:$0xff]   ;;  %v1333_v34 = vld [vmem:[#allocation3 + $0x30] sm:$0xff]   ;;  %v1334_v35 = vld [vmem:[#allocation3 + $0x38] sm:$0xff]  }
  0x43   :  { %v1335_v36 = vld [vmem:[#allocation3 + $0x40] sm:$0xff]   ;;  %v1336_v37 = vld [vmem:[#allocation3 + $0x48] sm:$0xff]   ;;  %v1337_v38 = vld [vmem:[#allocation3 + $0x50] sm:$0xff]  }
  0x44   :  { %1185 = vmatpush3.bf16.msra.mxu1 %v1346_v21  ;;  %v1354_v39 = vld [vmem:[#allocation8 + $0x28] sm:$0xff]   ;;  %v1338_v40 = vld [vmem:[#allocation3 + $0x58] sm:$0xff]   ;;  %v1355_v41 = vld [vmem:[#allocation8 + $0x70] sm:$0xff]  }
  0x45   :  { %342 = vmatpush1.bf16.msra.mxu0 %v1314_v8  ;;  %1186 = vmatprep.subr.bf16.mxu1 %v1347_v22  ;;  %v1356_v42 = vld [vmem:[#allocation8 + $0x30] sm:$0xff]   ;;  %v1357_v43 = vld [vmem:[#allocation8 + $0x78] sm:$0xff]   ;;  %v1339_v45 = vld [vmem:[#allocation3 + $0x60] sm:$0xff]  }
  0x46   :  { %343 = vmatprep.subr.bf16.mxu0 %v1315_v9  ;;  %v1358_v44 = vld [vmem:[#allocation8 + $0x38] sm:$0xff]   ;;  %v1340_v46 = vld [vmem:[#allocation3 + $0x68] sm:$0xff]   ;;  %v1341_v47 = vld [vmem:[#allocation3 + $0x70] sm:$0xff]  }
  0x47   :  { %v1342_v48 = vld [vmem:[#allocation3 + $0x78] sm:$0xff]   ;;  %v147_v52 = vld [vmem:[%s1672_s2] sm:$0x3] }
  0x48   :  { %1187 = vmatpush3.bf16.msra.mxu1 %v1348_v23  ;;  %v1550_v54 = vrot.slane %v147_v52, %v151_v51  ;;  %v1552_v55 = vrot.slane %v147_v52, %v155_v53 }
  0x49   :  { %344 = vmatpush1.bf16.msra.mxu0 %v1317_v10  ;;  %1188 = vmatprep.subr.bf16.mxu1 %v1349_v24 }
  0x4a   :  { %345 = vmatprep.subr.bf16.mxu0 %v1318_v11 }
  0x4c   :  { %1189 = vmatpush3.bf16.msra.mxu1 %v1350_v26 }
  0x4d   :  { %346 = vmatpush1.bf16.msra.mxu0 %v1320_v12  ;;  %1190 = vmatprep.subr.bf16.mxu1 %v1351_v27 }
  0x4e   :  { %347 = vmatprep.subr.bf16.mxu0 %v1321_v13 }
  0x50   :  { %1191 = vmatpush3.bf16.msra.mxu1 %v1352_v28 }
  0x51   :  { %348 = vmatpush1.bf16.msra.mxu0 %v1323_v14  ;;  %1192 = vmatprep.subr.bf16.mxu1 %v1353_v29 }
  0x52   :  { %349 = vmatprep.subr.bf16.mxu0 %v1324_v15 }
  0x54   :  { %1193 = vmatpush3.bf16.msra.mxu1 %v1354_v39 }
  0x55   :  { %350 = vmatpush1.bf16.msra.mxu0 %v1326_v16  ;;  %1194 = vmatprep.subr.bf16.mxu1 %v1355_v41 }
  0x58   :  { %368 = vmatmul.mubr.bf16.vlgmr.msra.gmra.mrb[0].mxu0 %v1327_v18  ;;  %1195 = vmatpush3.bf16.msra.mxu1 %v1356_v42 }
  0x59   :  { %377 = vmatprep.mubr.bf16.mxu0 %v1460_v0  ;;  %1196 = vmatprep.subr.bf16.mxu1 %v1357_v43 }
  0x5c   :  { %1197 = vmatpush3.bf16.msra.mxu1 %v1358_v44 }
  0x60   :  { %378 = vmatmul.mubr.bf16.gmra.mrb[4].mxu0 %v1328_v25 }
  0x61   :  { %387 = vmatprep.mubr.bf16.mxu0 %v1460_v0 }
  0x68   :  { %388 = vmatmul.mubr.bf16.gmra.mrb[8].mxu0 %v1329_v30 }
  0x69   :  { %397 = vmatprep.mubr.bf16.mxu0 %v1460_v0 }
  0x70   :  { %398 = vmatmul.mubr.bf16.gmra.mrb[12].mxu0 %v1330_v31 }
  0x71   :  { %407 = vmatprep.mubr.bf16.mxu0 %v1460_v0 }
  0x78   :  { %408 = vmatmul.mubr.bf16.gmra.mrb[16].mxu0 %v1331_v32 }
  0x79   :  { %417 = vmatprep.mubr.bf16.mxu0 %v1460_v0 }
  0x80   :  { %418 = vmatmul.mubr.bf16.gmra.mrb[20].mxu0 %v1332_v33 }
  0x81   :  { %427 = vmatprep.mubr.bf16.mxu0 %v1460_v0 }
  0x88   :  { %428 = vmatmul.mubr.bf16.gmra.mrb[24].mxu0 %v1333_v34 }
  0x89   :  { %437 = vmatprep.mubr.bf16.mxu0 %v1460_v0 }
  0x90   :  { %438 = vmatmul.mubr.bf16.gmra.mrb[28].mxu0 %v1334_v35 }
  0x91   :  { %447 = vmatprep.mubr.bf16.mxu0 %v1460_v0 }
  0x98   :  { %448 = vmatmul.mubr.bf16.gmra.mrb[32].mxu0 %v1335_v36 }
  0x99   :  { %457 = vmatprep.mubr.bf16.mxu0 %v1460_v0 }
  0xa0   :  { %458 = vmatmul.mubr.bf16.gmra.mrb[36].mxu0 %v1336_v37 }
  0xa1   :  { %467 = vmatprep.mubr.bf16.mxu0 %v1460_v0 }
  0xa8   :  { %468 = vmatmul.mubr.bf16.gmra.mrb[40].mxu0 %v1337_v38 }
  0xa9   :  { %477 = vmatprep.mubr.bf16.mxu0 %v1460_v0 }
  0xb0   :  { %478 = vmatmul.mubr.bf16.gmra.mrb[44].mxu0 %v1338_v40 }
  0xb1   :  { %487 = vmatprep.mubr.bf16.mxu0 %v1460_v0 }
  0xb8   :  { %488 = vmatmul.mubr.bf16.gmra.mrb[48].mxu0 %v1339_v45 }
  0xb9   :  { %497 = vmatprep.mubr.bf16.mxu0 %v1460_v0 }
  0xc0   :  { %498 = vmatmul.mubr.bf16.gmra.mrb[52].mxu0 %v1340_v46 }
  0xc1   :  { %507 = vmatprep.mubr.bf16.mxu0 %v1460_v0 }
  0xc8   :  { %508 = vmatmul.mubr.bf16.gmra.mrb[56].mxu0 %v1341_v47 }
  0xc9   :  { %517 = vmatprep.mubr.bf16.mxu0 %v1460_v0 }
  0xd0   :  { %518 = vmatmul.mubr.bf16.gmra.mrb[60].mxu0 %v1342_v48 }
 0x12b   :  { %v369_v56 = vpop.f32.mrb[0].mxu0 }
 0x12c   :  { %v370_v57 = vadd.f32 %v369_v56, %v1550_v54  ;;  %v371_v58 = vpop.f32.mrb[1].mxu0 }
 0x12d   :  { %v372_v59 = vadd.f32 %v371_v58, %v1552_v55  ;;  %v373_v60 = vpop.f32.mrb[2].mxu0 }
 0x12e   :  { %v374_v61 = vadd.f32 %v373_v60, %v1550_v54  ;;  %v375_v62 = vpop.f32.mrb[3].mxu0  ;;  %v528_v0 = vmax.f32 %v370_v57, 0.0 }
 0x12f   :  { %v376_v63 = vadd.f32 %v375_v62, %v1552_v55  ;;  %v529_v2 = vmax.f32 %v372_v59, 0.0 }
 0x130   :  { %v530_v1 = vmax.f32 %v374_v61, 0.0 }
 0x131   :  { %v531_v3 = vmax.f32 %v376_v63, 0.0 }
 0x132   :  { %v624_v4 = vpack.c.bf16 %v530_v1, %v528_v0 }
 0x133   :  { %v379_v5 = vpop.f32.mrb[4].mxu0  ;;  %v625_v6 = vpack.c.bf16 %v531_v3, %v529_v2 }
 0x134   :  { %v380_v7 = vadd.f32 %v379_v5, %v1550_v54  ;;  %v381_v8 = vpop.f32.mrb[5].mxu0 }
 0x135   :  { %v382_v9 = vadd.f32 %v381_v8, %v1552_v55  ;;  %v383_v10 = vpop.f32.mrb[6].mxu0  ;;  %816 = vmatprep.mubr.bf16.mxu1 %v625_v6 }
 0x136   :  { %v384_v11 = vadd.f32 %v383_v10, %v1550_v54  ;;  %v385_v12 = vpop.f32.mrb[7].mxu0  ;;  %817 = vmatmul.mubr.bf16.vlgmr.msra.gmra.mrb[0].mxu1 %v624_v4  ;;  %v532_v14 = vmax.f32 %v380_v7, 0.0 }
 0x137   :  { %v386_v13 = vadd.f32 %v385_v12, %v1552_v55  ;;  %v533_v16 = vmax.f32 %v382_v9, 0.0 }
 0x138   :  { %v534_v15 = vmax.f32 %v384_v11, 0.0 }
 0x139   :  { %v535_v17 = vmax.f32 %v386_v13, 0.0 }
 0x13a   :  { %v626_v18 = vpack.c.bf16 %v534_v15, %v532_v14 }
 0x13b   :  { %v627_v19 = vpack.c.bf16 %v535_v17, %v533_v16  ;;  %v389_v20 = vpop.f32.mrb[8].mxu0 }
 0x13c   :  { %v390_v21 = vadd.f32 %v389_v20, %v1550_v54  ;;  %v391_v22 = vpop.f32.mrb[9].mxu0 }
 0x13d   :  { %v392_v23 = vadd.f32 %v391_v22, %v1552_v55  ;;  %v393_v24 = vpop.f32.mrb[10].mxu0  ;;  %824 = vmatprep.mubr.bf16.mxu1 %v627_v19 }
 0x13e   :  { %v394_v25 = vadd.f32 %v393_v24, %v1550_v54  ;;  %v395_v26 = vpop.f32.mrb[11].mxu0  ;;  %825 = vmatmul.mubr.bf16.gmra.mrb[4].mxu1 %v626_v18  ;;  %v536_v28 = vmax.f32 %v390_v21, 0.0 }
 0x13f   :  { %v396_v27 = vadd.f32 %v395_v26, %v1552_v55  ;;  %v537_v30 = vmax.f32 %v392_v23, 0.0 }
 0x140   :  { %v538_v29 = vmax.f32 %v394_v25, 0.0 }
 0x141   :  { %v539_v31 = vmax.f32 %v396_v27, 0.0 }
 0x142   :  { %v628_v32 = vpack.c.bf16 %v538_v29, %v536_v28 }
 0x143   :  { %v629_v33 = vpack.c.bf16 %v539_v31, %v537_v30  ;;  %v399_v34 = vpop.f32.mrb[12].mxu0 }
 0x144   :  { %v400_v35 = vadd.f32 %v399_v34, %v1550_v54  ;;  %v401_v36 = vpop.f32.mrb[13].mxu0 }
 0x145   :  { %v402_v37 = vadd.f32 %v401_v36, %v1552_v55  ;;  %v403_v38 = vpop.f32.mrb[14].mxu0  ;;  %832 = vmatprep.mubr.bf16.mxu1 %v629_v33 }
 0x146   :  { %v404_v39 = vadd.f32 %v403_v38, %v1550_v54  ;;  %v405_v40 = vpop.f32.mrb[15].mxu0  ;;  %833 = vmatmul.mubr.bf16.gmra.mrb[8].mxu1 %v628_v32  ;;  %v540_v42 = vmax.f32 %v400_v35, 0.0 }
 0x147   :  { %v406_v41 = vadd.f32 %v405_v40, %v1552_v55  ;;  %v541_v44 = vmax.f32 %v402_v37, 0.0 }
 0x148   :  { %v542_v43 = vmax.f32 %v404_v39, 0.0 }
 0x149   :  { %v543_v45 = vmax.f32 %v406_v41, 0.0 }
 0x14a   :  { %v630_v46 = vpack.c.bf16 %v542_v43, %v540_v42 }
 0x14b   :  { %v631_v47 = vpack.c.bf16 %v543_v45, %v541_v44  ;;  %v409_v48 = vpop.f32.mrb[16].mxu0 }
 0x14c   :  { %v410_v49 = vadd.f32 %v409_v48, %v1550_v54  ;;  %v411_v50 = vpop.f32.mrb[17].mxu0 }
 0x14d   :  { %v412_v51 = vadd.f32 %v411_v50, %v1552_v55  ;;  %v413_v52 = vpop.f32.mrb[18].mxu0  ;;  %840 = vmatprep.mubr.bf16.mxu1 %v631_v47 }
 0x14e   :  { %v414_v53 = vadd.f32 %v413_v52, %v1550_v54  ;;  %v415_v56 = vpop.f32.mrb[19].mxu0  ;;  %841 = vmatmul.mubr.bf16.gmra.mrb[12].mxu1 %v630_v46  ;;  %v544_v58 = vmax.f32 %v410_v49, 0.0 }
 0x14f   :  { %v416_v57 = vadd.f32 %v415_v56, %v1552_v55  ;;  %v545_v60 = vmax.f32 %v412_v51, 0.0 }
 0x150   :  { %v546_v59 = vmax.f32 %v414_v53, 0.0 }
 0x151   :  { %v547_v61 = vmax.f32 %v416_v57, 0.0 }
 0x152   :  { %v632_v62 = vpack.c.bf16 %v546_v59, %v544_v58 }
 0x153   :  { %v633_v63 = vpack.c.bf16 %v547_v61, %v545_v60  ;;  %v419_v0 = vpop.f32.mrb[20].mxu0 }
 0x154   :  { %v420_v1 = vadd.f32 %v419_v0, %v1550_v54  ;;  %v421_v2 = vpop.f32.mrb[21].mxu0 }
 0x155   :  { %v422_v3 = vadd.f32 %v421_v2, %v1552_v55  ;;  %v423_v4 = vpop.f32.mrb[22].mxu0  ;;  %848 = vmatprep.mubr.bf16.mxu1 %v633_v63 }
 0x156   :  { %v424_v5 = vadd.f32 %v423_v4, %v1550_v54  ;;  %v425_v6 = vpop.f32.mrb[23].mxu0  ;;  %849 = vmatmul.mubr.bf16.gmra.mrb[16].mxu1 %v632_v62  ;;  %v548_v8 = vmax.f32 %v420_v1, 0.0 }
 0x157   :  { %v426_v7 = vadd.f32 %v425_v6, %v1552_v55  ;;  %v549_v10 = vmax.f32 %v422_v3, 0.0 }
 0x158   :  { %v550_v9 = vmax.f32 %v424_v5, 0.0 }
 0x159   :  { %v551_v11 = vmax.f32 %v426_v7, 0.0 }
 0x15a   :  { %v634_v12 = vpack.c.bf16 %v550_v9, %v548_v8 }
 0x15b   :  { %v635_v13 = vpack.c.bf16 %v551_v11, %v549_v10  ;;  %v429_v14 = vpop.f32.mrb[24].mxu0 }
 0x15c   :  { %v430_v15 = vadd.f32 %v429_v14, %v1550_v54  ;;  %v431_v16 = vpop.f32.mrb[25].mxu0 }
 0x15d   :  { %v432_v17 = vadd.f32 %v431_v16, %v1552_v55  ;;  %v433_v18 = vpop.f32.mrb[26].mxu0  ;;  %856 = vmatprep.mubr.bf16.mxu1 %v635_v13 }
 0x15e   :  { %v434_v19 = vadd.f32 %v433_v18, %v1550_v54  ;;  %v435_v20 = vpop.f32.mrb[27].mxu0  ;;  %857 = vmatmul.mubr.bf16.gmra.mrb[20].mxu1 %v634_v12  ;;  %v552_v22 = vmax.f32 %v430_v15, 0.0 }
 0x15f   :  { %v436_v21 = vadd.f32 %v435_v20, %v1552_v55  ;;  %v553_v24 = vmax.f32 %v432_v17, 0.0 }
 0x160   :  { %v554_v23 = vmax.f32 %v434_v19, 0.0 }
 0x161   :  { %v555_v25 = vmax.f32 %v436_v21, 0.0 }
 0x162   :  { %v636_v26 = vpack.c.bf16 %v554_v23, %v552_v22 }
 0x163   :  { %v637_v27 = vpack.c.bf16 %v555_v25, %v553_v24  ;;  %v439_v28 = vpop.f32.mrb[28].mxu0 }
 0x164   :  { %v440_v29 = vadd.f32 %v439_v28, %v1550_v54  ;;  %v441_v30 = vpop.f32.mrb[29].mxu0 }
 0x165   :  { %v442_v31 = vadd.f32 %v441_v30, %v1552_v55  ;;  %v443_v32 = vpop.f32.mrb[30].mxu0  ;;  %864 = vmatprep.mubr.bf16.mxu1 %v637_v27 }
 0x166   :  { %v444_v33 = vadd.f32 %v443_v32, %v1550_v54  ;;  %v445_v34 = vpop.f32.mrb[31].mxu0  ;;  %865 = vmatmul.mubr.bf16.gmra.mrb[24].mxu1 %v636_v26  ;;  %v556_v36 = vmax.f32 %v440_v29, 0.0 }
 0x167   :  { %v446_v35 = vadd.f32 %v445_v34, %v1552_v55  ;;  %v557_v38 = vmax.f32 %v442_v31, 0.0 }
 0x168   :  { %v558_v37 = vmax.f32 %v444_v33, 0.0 }
 0x169   :  { %v559_v39 = vmax.f32 %v446_v35, 0.0 }
 0x16a   :  { %v638_v40 = vpack.c.bf16 %v558_v37, %v556_v36 }
 0x16b   :  { %v639_v41 = vpack.c.bf16 %v559_v39, %v557_v38  ;;  %v449_v42 = vpop.f32.mrb[32].mxu0 }
 0x16c   :  { %v450_v43 = vadd.f32 %v449_v42, %v1550_v54  ;;  %v451_v44 = vpop.f32.mrb[33].mxu0 }
 0x16d   :  { %v452_v45 = vadd.f32 %v451_v44, %v1552_v55  ;;  %v453_v46 = vpop.f32.mrb[34].mxu0  ;;  %872 = vmatprep.mubr.bf16.mxu1 %v639_v41 }
 0x16e   :  { %v454_v47 = vadd.f32 %v453_v46, %v1550_v54  ;;  %v455_v48 = vpop.f32.mrb[35].mxu0  ;;  %873 = vmatmul.mubr.bf16.gmra.mrb[28].mxu1 %v638_v40  ;;  %v560_v50 = vmax.f32 %v450_v43, 0.0 }
 0x16f   :  { %v456_v49 = vadd.f32 %v455_v48, %v1552_v55  ;;  %v561_v52 = vmax.f32 %v452_v45, 0.0 }
 0x170   :  { %v562_v51 = vmax.f32 %v454_v47, 0.0 }
 0x171   :  { %v563_v53 = vmax.f32 %v456_v49, 0.0 }
 0x172   :  { %v640_v56 = vpack.c.bf16 %v562_v51, %v560_v50 }
 0x173   :  { %v641_v57 = vpack.c.bf16 %v563_v53, %v561_v52  ;;  %v459_v58 = vpop.f32.mrb[36].mxu0 }
 0x174   :  { %v460_v59 = vadd.f32 %v459_v58, %v1550_v54  ;;  %v461_v60 = vpop.f32.mrb[37].mxu0 }
 0x175   :  { %v462_v61 = vadd.f32 %v461_v60, %v1552_v55  ;;  %v463_v62 = vpop.f32.mrb[38].mxu0  ;;  %880 = vmatprep.mubr.bf16.mxu1 %v641_v57 }
 0x176   :  { %v464_v63 = vadd.f32 %v463_v62, %v1550_v54  ;;  %v465_v0 = vpop.f32.mrb[39].mxu0  ;;  %881 = vmatmul.mubr.bf16.gmra.mrb[32].mxu1 %v640_v56  ;;  %v564_v2 = vmax.f32 %v460_v59, 0.0 }
 0x177   :  { %v466_v1 = vadd.f32 %v465_v0, %v1552_v55  ;;  %v565_v4 = vmax.f32 %v462_v61, 0.0 }
 0x178   :  { %v566_v3 = vmax.f32 %v464_v63, 0.0 }
 0x179   :  { %v567_v5 = vmax.f32 %v466_v1, 0.0 }
 0x17a   :  { %v642_v6 = vpack.c.bf16 %v566_v3, %v564_v2 }
 0x17b   :  { %v643_v7 = vpack.c.bf16 %v567_v5, %v565_v4  ;;  %v469_v8 = vpop.f32.mrb[40].mxu0 }
 0x17c   :  { %v470_v9 = vadd.f32 %v469_v8, %v1550_v54  ;;  %v471_v10 = vpop.f32.mrb[41].mxu0 }
 0x17d   :  { %v472_v11 = vadd.f32 %v471_v10, %v1552_v55  ;;  %v473_v12 = vpop.f32.mrb[42].mxu0  ;;  %888 = vmatprep.mubr.bf16.mxu1 %v643_v7 }
 0x17e   :  { %v474_v13 = vadd.f32 %v473_v12, %v1550_v54  ;;  %v475_v14 = vpop.f32.mrb[43].mxu0  ;;  %889 = vmatmul.mubr.bf16.gmra.mrb[36].mxu1 %v642_v6  ;;  %v568_v16 = vmax.f32 %v470_v9, 0.0 }
 0x17f   :  { %v476_v15 = vadd.f32 %v475_v14, %v1552_v55  ;;  %v569_v18 = vmax.f32 %v472_v11, 0.0 }
 0x180   :  { %v570_v17 = vmax.f32 %v474_v13, 0.0 }
 0x181   :  { %v571_v19 = vmax.f32 %v476_v15, 0.0 }
 0x182   :  { %v644_v20 = vpack.c.bf16 %v570_v17, %v568_v16 }
 0x183   :  { %v645_v21 = vpack.c.bf16 %v571_v19, %v569_v18  ;;  %v479_v22 = vpop.f32.mrb[44].mxu0 }
 0x184   :  { %v480_v23 = vadd.f32 %v479_v22, %v1550_v54  ;;  %v481_v24 = vpop.f32.mrb[45].mxu0 }
 0x185   :  { %v482_v25 = vadd.f32 %v481_v24, %v1552_v55  ;;  %v483_v26 = vpop.f32.mrb[46].mxu0  ;;  %896 = vmatprep.mubr.bf16.mxu1 %v645_v21 }
 0x186   :  { %v484_v27 = vadd.f32 %v483_v26, %v1550_v54  ;;  %v485_v28 = vpop.f32.mrb[47].mxu0  ;;  %897 = vmatmul.mubr.bf16.gmra.mrb[40].mxu1 %v644_v20  ;;  %v572_v30 = vmax.f32 %v480_v23, 0.0 }
 0x187   :  { %v486_v29 = vadd.f32 %v485_v28, %v1552_v55  ;;  %v573_v32 = vmax.f32 %v482_v25, 0.0 }
 0x188   :  { %v574_v31 = vmax.f32 %v484_v27, 0.0 }
 0x189   :  { %v575_v33 = vmax.f32 %v486_v29, 0.0 }
 0x18a   :  { %v646_v34 = vpack.c.bf16 %v574_v31, %v572_v30 }
 0x18b   :  { %v647_v35 = vpack.c.bf16 %v575_v33, %v573_v32  ;;  %v489_v36 = vpop.f32.mrb[48].mxu0  ;;  %v1621_v32 = vld [vmem:[%s1674_s4] ss:$0 sm:$0xff]  ;;  %s1461_s4 = smov [#allocation9]  }
 0x18c   :  { %v490_v37 = vadd.f32 %v489_v36, %v1550_v54  ;;  %v491_v38 = vpop.f32.mrb[49].mxu0  ;;  %s1120_s10 = sshll.u32 %s1461_s4, 4  ;;  %s1121_s10 = int_to_ptr.vmem [resolvable:$true] %s1120_s10 }
 0x18d   :  { %v492_v39 = vadd.f32 %v491_v38, %v1552_v55  ;;  %v493_v40 = vpop.f32.mrb[50].mxu0  ;;  %904 = vmatprep.mubr.bf16.mxu1 %v647_v35  ;;  %s1425_s11 = scalar_lea.vmem %s1121_s10, 4096  ;;  %p1430_p11 = scmp.lt.s32.totalorder %s1121_s10, %s1121_s10 }
 0x18e   :  { %v494_v41 = vadd.f32 %v493_v40, %v1550_v54  ;;  %v495_v42 = vpop.f32.mrb[51].mxu0  ;;  %905 = vmatmul.mubr.bf16.gmra.mrb[44].mxu1 %v646_v34  ;;  %v576_v44 = vmax.f32 %v490_v37, 0.0  ;;  %p1426_p10 = scmp.ne.s32.totalorder %s1121_s10, %s1425_s11  ;;  %p1431_p12 = scmp.lt.s32.totalorder %s1425_s11, %s1425_s11 }
 0x18f   :  { %v496_v43 = vadd.f32 %v495_v42, %v1552_v55  ;;  %v577_v46 = vmax.f32 %v492_v39, 0.0 }
 0x190   :  { %v578_v45 = vmax.f32 %v494_v41, 0.0  ;;  %p1432_p13 = por %p1431_p12, %p1430_p11 }
 0x191   :  { %v579_v47 = vmax.f32 %v496_v43, 0.0 }
 0x192   :  { %v648_v48 = vpack.c.bf16 %v578_v45, %v576_v44  ;;  %p1433_p0 = pnand %p1432_p13, %p1426_p10 }
 0x193   :  { %v649_v49 = vpack.c.bf16 %v579_v47, %v577_v46  ;;  %v499_v50 = vpop.f32.mrb[52].mxu0 }
 0x194   :  { %v500_v51 = vadd.f32 %v499_v50, %v1550_v54  ;;  %v501_v52 = vpop.f32.mrb[53].mxu0 }
 0x195   :  { %v502_v53 = vadd.f32 %v501_v52, %v1552_v55  ;;  %v503_v56 = vpop.f32.mrb[54].mxu0  ;;  %912 = vmatprep.mubr.bf16.mxu1 %v649_v49 }
 0x196   :  { %v504_v57 = vadd.f32 %v503_v56, %v1550_v54  ;;  %v505_v58 = vpop.f32.mrb[55].mxu0  ;;  %913 = vmatmul.mubr.bf16.gmra.mrb[48].mxu1 %v648_v48  ;;  %v580_v60 = vmax.f32 %v500_v51, 0.0 }
 0x197   :  { %v506_v59 = vadd.f32 %v505_v58, %v1552_v55  ;;  %v581_v62 = vmax.f32 %v502_v53, 0.0 }
 0x198   :  { %v582_v61 = vmax.f32 %v504_v57, 0.0 }
 0x199   :  { %v583_v63 = vmax.f32 %v506_v59, 0.0 }
 0x19a   :  { %v650_v0 = vpack.c.bf16 %v582_v61, %v580_v60 }
 0x19b   :  { %v651_v1 = vpack.c.bf16 %v583_v63, %v581_v62  ;;  %v509_v2 = vpop.f32.mrb[56].mxu0 }
 0x19c   :  { %v510_v3 = vadd.f32 %v509_v2, %v1550_v54  ;;  %v511_v4 = vpop.f32.mrb[57].mxu0 }
 0x19d   :  { %v512_v5 = vadd.f32 %v511_v4, %v1552_v55  ;;  %v513_v6 = vpop.f32.mrb[58].mxu0  ;;  %920 = vmatprep.mubr.bf16.mxu1 %v651_v1 }
 0x19e   :  { %v514_v7 = vadd.f32 %v513_v6, %v1550_v54  ;;  %v515_v8 = vpop.f32.mrb[59].mxu0  ;;  %921 = vmatmul.mubr.bf16.gmra.mrb[52].mxu1 %v650_v0  ;;  %v584_v10 = vmax.f32 %v510_v3, 0.0 }
 0x19f   :  { %v516_v9 = vadd.f32 %v515_v8, %v1552_v55  ;;  %v585_v12 = vmax.f32 %v512_v5, 0.0 }
 0x1a0   :  { %v586_v11 = vmax.f32 %v514_v7, 0.0 }
 0x1a1   :  { %v587_v13 = vmax.f32 %v516_v9, 0.0 }
 0x1a2   :  { %v652_v14 = vpack.c.bf16 %v586_v11, %v584_v10 }
 0x1a3   :  { %v653_v15 = vpack.c.bf16 %v587_v13, %v585_v12  ;;  %v519_v16 = vpop.f32.mrb[60].mxu0 }
 0x1a4   :  { %v520_v17 = vadd.f32 %v519_v16, %v1550_v54  ;;  %v521_v18 = vpop.f32.mrb[61].mxu0 }
 0x1a5   :  { %v522_v19 = vadd.f32 %v521_v18, %v1552_v55  ;;  %v523_v20 = vpop.f32.mrb[62].mxu0  ;;  %928 = vmatprep.mubr.bf16.mxu1 %v653_v15 }
 0x1a6   :  { %v524_v21 = vadd.f32 %v523_v20, %v1550_v54  ;;  %v525_v22 = vpop.f32.mrb[63].mxu0  ;;  %929 = vmatmul.mubr.bf16.gmra.mrb[56].mxu1 %v652_v14  ;;  %v588_v24 = vmax.f32 %v520_v17, 0.0 }
 0x1a7   :  { %v526_v23 = vadd.f32 %v525_v22, %v1552_v55  ;;  %v589_v26 = vmax.f32 %v522_v19, 0.0 }
 0x1a8   :  { %v590_v25 = vmax.f32 %v524_v21, 0.0 }
 0x1a9   :  { %v591_v27 = vmax.f32 %v526_v23, 0.0 }
 0x1aa   :  { %v654_v28 = vpack.c.bf16 %v590_v25, %v588_v24 }
 0x1ab   :  { %v655_v29 = vpack.c.bf16 %v591_v27, %v589_v26 }
 0x1ad   :  { %936 = vmatprep.mubr.bf16.mxu1 %v655_v29 }
 0x1ae   :  { %937 = vmatmul.mubr.bf16.gmra.mrb[60].mxu1 %v654_v28 }
 0x209   :  { %v1198_v30 = vpop.f32.mrb[0].mxu1 }
 0x20a   :  { %v1199_v31 = vpop.f32.mrb[1].mxu1 }
 0x20b   :  { %v1200_v54 = vadd.f32 %v1199_v31, %v1198_v30  ;;  %v1201_v33 = vpop.f32.mrb[2].mxu1 }
 0x20c   :  { %v1202_v34 = vpop.f32.mrb[3].mxu1 }
 0x20d   :  { %v1051_v55 = vadd.f32 %v1200_v54, %v1621_v32  ;;  %v1203_v35 = vadd.f32 %v1202_v34, %v1201_v33 }
 0x20f   :  { %1083 = vst [vmem:[#allocation9] sm:$0xff] %v1051_v55  ;;  %v1052_v36 = vadd.f32 %v1203_v35, %v1621_v32 }
 0x211   :  { %1084 = vst [vmem:[#allocation9 + $0x8] sm:$0xff] %v1052_v36  ;;  %v1204_v37 = vpop.f32.mrb[4].mxu1 }
 0x212   :  { %v1205_v38 = vpop.f32.mrb[5].mxu1 }
 0x213   :  { %v1206_v39 = vadd.f32 %v1205_v38, %v1204_v37  ;;  %v1207_v40 = vpop.f32.mrb[6].mxu1 }
 0x214   :  { %v1208_v41 = vpop.f32.mrb[7].mxu1 }
 0x215   :  { %v1053_v42 = vadd.f32 %v1206_v39, %v1621_v32  ;;  %v1209_v43 = vadd.f32 %v1208_v41, %v1207_v40 }
 0x217   :  { %1085 = vst [vmem:[#allocation9 + $0x10] sm:$0xff] %v1053_v42  ;;  %v1054_v44 = vadd.f32 %v1209_v43, %v1621_v32 }
 0x219   :  { %1086 = vst [vmem:[#allocation9 + $0x18] sm:$0xff] %v1054_v44  ;;  %v1210_v45 = vpop.f32.mrb[8].mxu1 }
 0x21a   :  { %v1211_v46 = vpop.f32.mrb[9].mxu1 }
 0x21b   :  { %v1212_v47 = vadd.f32 %v1211_v46, %v1210_v45  ;;  %v1213_v48 = vpop.f32.mrb[10].mxu1 }
 0x21c   :  { %v1214_v49 = vpop.f32.mrb[11].mxu1 }
 0x21d   :  { %v1055_v50 = vadd.f32 %v1212_v47, %v1621_v32  ;;  %v1215_v51 = vadd.f32 %v1214_v49, %v1213_v48 }
 0x21f   :  { %1087 = vst [vmem:[#allocation9 + $0x20] sm:$0xff] %v1055_v50  ;;  %v1056_v52 = vadd.f32 %v1215_v51, %v1621_v32 }
 0x221   :  { %1088 = vst [vmem:[#allocation9 + $0x28] sm:$0xff] %v1056_v52  ;;  %v1216_v53 = vpop.f32.mrb[12].mxu1 }
 0x222   :  { %v1217_v56 = vpop.f32.mrb[13].mxu1 }
 0x223   :  { %v1218_v57 = vadd.f32 %v1217_v56, %v1216_v53  ;;  %v1219_v58 = vpop.f32.mrb[14].mxu1 }
 0x224   :  { %v1220_v59 = vpop.f32.mrb[15].mxu1 }
 0x225   :  { %v1057_v60 = vadd.f32 %v1218_v57, %v1621_v32  ;;  %v1221_v61 = vadd.f32 %v1220_v59, %v1219_v58 }
 0x227   :  { %1089 = vst [vmem:[#allocation9 + $0x30] sm:$0xff] %v1057_v60  ;;  %v1058_v62 = vadd.f32 %v1221_v61, %v1621_v32 }
 0x229   :  { %1090 = vst [vmem:[#allocation9 + $0x38] sm:$0xff] %v1058_v62  ;;  %v1222_v63 = vpop.f32.mrb[16].mxu1 }
 0x22a   :  { %v1223_v0 = vpop.f32.mrb[17].mxu1 }
 0x22b   :  { %v1224_v1 = vadd.f32 %v1223_v0, %v1222_v63  ;;  %v1225_v2 = vpop.f32.mrb[18].mxu1 }
 0x22c   :  { %v1226_v3 = vpop.f32.mrb[19].mxu1 }
 0x22d   :  { %v1059_v4 = vadd.f32 %v1224_v1, %v1621_v32  ;;  %v1227_v5 = vadd.f32 %v1226_v3, %v1225_v2 }
 0x22f   :  { %1091 = vst [vmem:[#allocation9 + $0x40] sm:$0xff] %v1059_v4  ;;  %v1060_v6 = vadd.f32 %v1227_v5, %v1621_v32 }
 0x231   :  { %1092 = vst [vmem:[#allocation9 + $0x48] sm:$0xff] %v1060_v6  ;;  %v1228_v7 = vpop.f32.mrb[20].mxu1 }
 0x232   :  { %v1229_v8 = vpop.f32.mrb[21].mxu1 }
 0x233   :  { %v1230_v9 = vadd.f32 %v1229_v8, %v1228_v7  ;;  %v1231_v10 = vpop.f32.mrb[22].mxu1 }
 0x234   :  { %v1232_v11 = vpop.f32.mrb[23].mxu1 }
 0x235   :  { %v1061_v12 = vadd.f32 %v1230_v9, %v1621_v32  ;;  %v1233_v13 = vadd.f32 %v1232_v11, %v1231_v10 }
 0x237   :  { %1093 = vst [vmem:[#allocation9 + $0x50] sm:$0xff] %v1061_v12  ;;  %v1062_v14 = vadd.f32 %v1233_v13, %v1621_v32 }
 0x239   :  { %1094 = vst [vmem:[#allocation9 + $0x58] sm:$0xff] %v1062_v14  ;;  %v1234_v15 = vpop.f32.mrb[24].mxu1 }
 0x23a   :  { %v1235_v16 = vpop.f32.mrb[25].mxu1 }
 0x23b   :  { %v1236_v17 = vadd.f32 %v1235_v16, %v1234_v15  ;;  %v1237_v18 = vpop.f32.mrb[26].mxu1 }
 0x23c   :  { %v1238_v19 = vpop.f32.mrb[27].mxu1 }
 0x23d   :  { %v1063_v20 = vadd.f32 %v1236_v17, %v1621_v32  ;;  %v1239_v21 = vadd.f32 %v1238_v19, %v1237_v18 }
 0x23f   :  { %1095 = vst [vmem:[#allocation9 + $0x60] sm:$0xff] %v1063_v20  ;;  %v1064_v22 = vadd.f32 %v1239_v21, %v1621_v32 }
 0x241   :  { %1096 = vst [vmem:[#allocation9 + $0x68] sm:$0xff] %v1064_v22  ;;  %v1240_v23 = vpop.f32.mrb[28].mxu1 }
 0x242   :  { %v1241_v24 = vpop.f32.mrb[29].mxu1 }
 0x243   :  { %v1242_v25 = vadd.f32 %v1241_v24, %v1240_v23  ;;  %v1243_v26 = vpop.f32.mrb[30].mxu1 }
 0x244   :  { %v1244_v27 = vpop.f32.mrb[31].mxu1 }
 0x245   :  { %v1065_v28 = vadd.f32 %v1242_v25, %v1621_v32  ;;  %v1245_v29 = vadd.f32 %v1244_v27, %v1243_v26 }
 0x247   :  { %1097 = vst [vmem:[#allocation9 + $0x70] sm:$0xff] %v1065_v28  ;;  %v1066_v30 = vadd.f32 %v1245_v29, %v1621_v32 }
 0x249   :  { %1098 = vst [vmem:[#allocation9 + $0x78] sm:$0xff] %v1066_v30  ;;  %v1246_v31 = vpop.f32.mrb[32].mxu1 }
 0x24a   :  { %v1247_v54 = vpop.f32.mrb[33].mxu1 }
 0x24b   :  { %v1248_v33 = vadd.f32 %v1247_v54, %v1246_v31  ;;  %v1249_v34 = vpop.f32.mrb[34].mxu1 }
 0x24c   :  { %v1250_v55 = vpop.f32.mrb[35].mxu1 }
 0x24d   :  { %v1067_v35 = vadd.f32 %v1248_v33, %v1621_v32  ;;  %v1251_v36 = vadd.f32 %v1250_v55, %v1249_v34 }
 0x24f   :  { %1099 = vst [vmem:[#allocation9 + $0x80] sm:$0xff] %v1067_v35  ;;  %v1068_v37 = vadd.f32 %v1251_v36, %v1621_v32 }
 0x251   :  { %1100 = vst [vmem:[#allocation9 + $0x88] sm:$0xff] %v1068_v37  ;;  %v1252_v38 = vpop.f32.mrb[36].mxu1 }
 0x252   :  { %v1253_v39 = vpop.f32.mrb[37].mxu1 }
 0x253   :  { %v1254_v40 = vadd.f32 %v1253_v39, %v1252_v38  ;;  %v1255_v41 = vpop.f32.mrb[38].mxu1 }
 0x254   :  { %v1256_v42 = vpop.f32.mrb[39].mxu1 }
 0x255   :  { %v1069_v43 = vadd.f32 %v1254_v40, %v1621_v32  ;;  %v1257_v44 = vadd.f32 %v1256_v42, %v1255_v41 }
 0x257   :  { %1101 = vst [vmem:[#allocation9 + $0x90] sm:$0xff] %v1069_v43  ;;  %v1070_v45 = vadd.f32 %v1257_v44, %v1621_v32 }
 0x259   :  { %1102 = vst [vmem:[#allocation9 + $0x98] sm:$0xff] %v1070_v45  ;;  %v1258_v46 = vpop.f32.mrb[40].mxu1 }
 0x25a   :  { %v1259_v47 = vpop.f32.mrb[41].mxu1 }
 0x25b   :  { %v1260_v48 = vadd.f32 %v1259_v47, %v1258_v46  ;;  %v1261_v49 = vpop.f32.mrb[42].mxu1 }
 0x25c   :  { %v1262_v50 = vpop.f32.mrb[43].mxu1 }
 0x25d   :  { %v1071_v51 = vadd.f32 %v1260_v48, %v1621_v32  ;;  %v1263_v52 = vadd.f32 %v1262_v50, %v1261_v49 }
 0x25f   :  { %1103 = vst [vmem:[#allocation9 + $0xa0] sm:$0xff] %v1071_v51  ;;  %v1072_v53 = vadd.f32 %v1263_v52, %v1621_v32 }
 0x261   :  { %1104 = vst [vmem:[#allocation9 + $0xa8] sm:$0xff] %v1072_v53  ;;  %v1264_v56 = vpop.f32.mrb[44].mxu1 }
 0x262   :  { %v1265_v57 = vpop.f32.mrb[45].mxu1 }
 0x263   :  { %v1266_v58 = vadd.f32 %v1265_v57, %v1264_v56  ;;  %v1267_v59 = vpop.f32.mrb[46].mxu1 }
 0x264   :  { %v1268_v60 = vpop.f32.mrb[47].mxu1 }
 0x265   :  { %v1073_v61 = vadd.f32 %v1266_v58, %v1621_v32  ;;  %v1269_v62 = vadd.f32 %v1268_v60, %v1267_v59 }
 0x267   :  { %1105 = vst [vmem:[#allocation9 + $0xb0] sm:$0xff] %v1073_v61  ;;  %v1074_v63 = vadd.f32 %v1269_v62, %v1621_v32 }
 0x269   :  { %1106 = vst [vmem:[#allocation9 + $0xb8] sm:$0xff] %v1074_v63  ;;  %v1270_v0 = vpop.f32.mrb[48].mxu1 }
 0x26a   :  { %v1271_v1 = vpop.f32.mrb[49].mxu1 }
 0x26b   :  { %v1272_v2 = vadd.f32 %v1271_v1, %v1270_v0  ;;  %v1273_v3 = vpop.f32.mrb[50].mxu1 }
 0x26c   :  { %v1274_v4 = vpop.f32.mrb[51].mxu1 }
 0x26d   :  { %v1075_v5 = vadd.f32 %v1272_v2, %v1621_v32  ;;  %v1275_v6 = vadd.f32 %v1274_v4, %v1273_v3 }
 0x26f   :  { %1107 = vst [vmem:[#allocation9 + $0xc0] sm:$0xff] %v1075_v5  ;;  %v1076_v7 = vadd.f32 %v1275_v6, %v1621_v32 }
 0x271   :  { %1108 = vst [vmem:[#allocation9 + $0xc8] sm:$0xff] %v1076_v7  ;;  %v1276_v8 = vpop.f32.mrb[52].mxu1 }
 0x272   :  { %v1277_v9 = vpop.f32.mrb[53].mxu1 }
 0x273   :  { %v1278_v10 = vadd.f32 %v1277_v9, %v1276_v8  ;;  %v1279_v11 = vpop.f32.mrb[54].mxu1 }
 0x274   :  { %v1280_v12 = vpop.f32.mrb[55].mxu1 }
 0x275   :  { %v1077_v13 = vadd.f32 %v1278_v10, %v1621_v32  ;;  %v1281_v14 = vadd.f32 %v1280_v12, %v1279_v11 }
 0x277   :  { %1109 = vst [vmem:[#allocation9 + $0xd0] sm:$0xff] %v1077_v13  ;;  %v1078_v15 = vadd.f32 %v1281_v14, %v1621_v32 }
 0x279   :  { %1110 = vst [vmem:[#allocation9 + $0xd8] sm:$0xff] %v1078_v15  ;;  %v1282_v16 = vpop.f32.mrb[56].mxu1 }
 0x27a   :  { %v1283_v17 = vpop.f32.mrb[57].mxu1 }
 0x27b   :  { %v1284_v18 = vadd.f32 %v1283_v17, %v1282_v16  ;;  %v1285_v19 = vpop.f32.mrb[58].mxu1 }
 0x27c   :  { %v1286_v20 = vpop.f32.mrb[59].mxu1 }
 0x27d   :  { %v1079_v21 = vadd.f32 %v1284_v18, %v1621_v32  ;;  %v1287_v22 = vadd.f32 %v1286_v20, %v1285_v19 }
 0x27f   :  { %1111 = vst [vmem:[#allocation9 + $0xe0] sm:$0xff] %v1079_v21  ;;  %v1080_v23 = vadd.f32 %v1287_v22, %v1621_v32 }
 0x281   :  { %1112 = vst [vmem:[#allocation9 + $0xe8] sm:$0xff] %v1080_v23  ;;  %v1288_v24 = vpop.f32.mrb[60].mxu1 }
 0x282   :  { %v1289_v25 = vpop.f32.mrb[61].mxu1 }
 0x283   :  { %v1290_v26 = vadd.f32 %v1289_v25, %v1288_v24  ;;  %v1291_v27 = vpop.f32.mrb[62].mxu1 }
 0x284   :  { %v1292_v28 = vpop.f32.mrb[63].mxu1 }
 0x285   :  { %v1081_v29 = vadd.f32 %v1290_v26, %v1621_v32  ;;  %v1293_v30 = vadd.f32 %v1292_v28, %v1291_v27 }
 0x287   :  { %1113 = vst [vmem:[#allocation9 + $0xf0] sm:$0xff] %v1081_v29  ;;  %v1082_v31 = vadd.f32 %v1293_v30, %v1621_v32 }
 0x289   :  { %1114 = vst [vmem:[#allocation9 + $0xf8] sm:$0xff] %v1082_v31 }
 0x28a   :  { %1436 = shalt.err (!%p1433_p0)
}
 0x28b   :  { %s1437_s14 = scalar_lea.hbm %s1675_s5, 4096 }
 0x28c   :  { %p1438_p1 = scmp.ne.s32.totalorder %s1675_s5, %s1437_s14  ;;  %p1441_p2 = scmp.lt.u32.totalorder %s1437_s14, %s1675_s5 }
 0x28e   :  { %p1443_p3 = pnand %p1441_p2, %p1438_p1 }
 0x290   :  { %1446 = shalt.err (!%p1443_p3)
}
 0x291   :  { %1126 = dma.vmem_to_hbm [thread:$0]  %s1121_s10, 4096, %s1675_s5, [#allocation5], %s1454_s28, %s1454_s28, %s1455_s29  }
 0x292   :  { %1451 = dma.done.wait [#allocation5], 4096  }
 0x293   :  { %1452 = vsyncadd [#allocation5], 4294963200 }
 0x294   :  { %1130 = vsyncpa [#allocation4], 1 }
 0x295   :  { %1131 = vsyncpa [#allocation7], 1 }
 0x296   :  { %1132 = vsyncpa [#allocation5], 1 }

</bundles_post_ra>
